<compile_context>
chip_gen: v6e
topology: v6e:2x2x1
jax: 0.10.0
libtpu: 0.0.40
codegen_flags: <defaults>
</compile_context>

<pallas_src>
import jax
import jax.numpy as jnp
import numpy as np
from jax.experimental import pallas as pl
from jax.experimental.pallas import tpu as pltpu


def relation_attention_kernel(p_ref, x_ref, mask_ref, wv_ref, wvec_ref,
                              scal_ref, out_ref):
  tb, C, H = p_ref.shape
  L = x_ref.shape[1]

  p = p_ref[...]                       # (tb, C, H) f32
  x = x_ref[...]                       # (tb, L, H) f32
  mask = mask_ref[...]                 # (tb, 1, L) f32, 1 = keep

  w_sq = wvec_ref[0]                   # (H,)  fused Wq^T @ ws_q
  w_sk = wvec_ref[1]                   # (H,)  fused Wk^T @ ws_k
  w_go = wvec_ref[2]                   # (H,)  gate weight, "out" half
  w_gop = wvec_ref[3]                  # (H,)  gate weight, w_go + w_gp (folded)
  b_v = wvec_ref[4]                    # (H,)  value bias
  c_score = scal_ref[0]                # scalar: bq.ws_q + bk.ws_k + bs
  b_gate = scal_ref[1]                 # scalar: gate bias

  # Value projection on the MXU with a flattened M = tb*L (bf16 operands,
  # f32 accumulation when mxu_dtype = bf16).
  x2 = x.reshape(tb * L, H)
  v = (jnp.dot(x2.astype(wv_ref.dtype), wv_ref[...],
               preferred_element_type=jnp.float32) + b_v).reshape(tb, L, H)

  # Fused score: score[b,c,l] = p[b,c].w_sq + x[b,l].w_sk + c_score
  # (exact fold of the q/k Linear layers into the score Linear).
  # sq and the gate terms are VPU multiply + lane reduce (a 1-wide matmul
  # wastes the MXU).  sk needs L on the lane axis of a (tb, C, L) tensor, so
  # it is produced by a tiny batched einsum against a broadcast weight row
  # instead of a sublane->lane relayout of a (tb, L) reduce.
  sq = jnp.sum(p * w_sq, axis=-1, keepdims=True)                  # (tb, C, 1)
  w_sk_b = jnp.broadcast_to(w_sk, (tb, C, H))
  sk = jnp.einsum('bch,blh->bcl', w_sk_b, x,
                  preferred_element_type=jnp.float32)             # (tb, C, L)
  score = sq + sk + c_score
  # masked_fill(mask == 0, -1e9); mask is an exact 0/1 tensor, use a threshold.
  score = jnp.where(mask > 0.5, score, -1000000000.0)

  # Softmax over L (f32 elementwise; normalization via the EUP reciprocal).
  m = jnp.max(score, axis=-1, keepdims=True)
  e = jnp.exp(score - m)
  attn = e * pl.reciprocal(jnp.sum(e, axis=-1, keepdims=True), approx=True)

  # ctx = einsum('bcl,bld->bcd');  out = ctx + p  (never materialized: see gate)
  ctx = jnp.einsum('bcl,blh->bch', attn.astype(wv_ref.dtype),
                   v.astype(wv_ref.dtype),
                   preferred_element_type=jnp.float32)

  # gate(cat([out, p])) == ctx.w_go + p.(w_go + w_gp) + b_gate   (exact fold)
  g_lin = (jnp.sum(ctx * w_go, axis=-1, keepdims=True)
           + jnp.sum(p * w_gop, axis=-1, keepdims=True) + b_gate)
  g = jax.nn.sigmoid(g_lin)
  # g*out + (1-g)*p == p + g*ctx   (exact fold)
  out_ref[...] = p + g * ctx


def _pick_tb(B, C, L, H):
  """Batch-elements-per-grid-step, sized for VMEM and >=2 parallel steps."""
  if B < 2:
    return 1
  budget = 4 * 1024 * 1024                     # conservative (v7x: 64 MiB VMEM)
  per_elem = (2 * C + L) * H * 4 * 2 + L * 4 * 2   # double-buffered p/x/out/mask
  cap = max(1, budget // per_elem)
  limit = min(cap, B // 2)                     # keep >= 2 steps (v7x has 2 TCs)
  tb = 1
  for d in range(1, int(limit) + 1):
    if B % d == 0 and (d == 1 or L % 8 == 0):  # flatten needs L % 8 == 0
      tb = d
  return tb


def relation_attention(p, x, mask, params, *, tb=None, mxu_dtype=jnp.bfloat16):
  """params = (wq, bq, wk, bk, wv, bv, ws, bs, wg, bg) in PyTorch layout."""
  B, C, H = p.shape
  L = x.shape[1]
  wq, bq, wk, bk, wv, bv, ws, bs, wg, bg = params
  f32 = jnp.float32

  # ---- one-time weight preparation (plain JAX glue) -------------------------
  with jax.default_matmul_precision("float32"):
    ws_q = ws[0, :H].astype(f32)             # score weight, q half
    ws_k = ws[0, H:].astype(f32)             # score weight, k half
    # Fold the q/k projections into the score (exact matmul associativity):
    #   q.ws_q = (p @ Wq^T + bq).ws_q = p.(Wq^T ws_q) + bq.ws_q
    w_sq = wq.T.astype(f32) @ ws_q                                     # (H,)
    w_sk = wk.T.astype(f32) @ ws_k                                     # (H,)
    c_score = (jnp.dot(bq.astype(f32), ws_q)
               + jnp.dot(bk.astype(f32), ws_k) + bs.astype(f32)[0])
  w_go = wg[0, :H].astype(f32)               # gate weight, "out" half
  w_gp = wg[0, H:].astype(f32)               # gate weight, "p" half
  w_gop = w_go + w_gp                        # folded: out = ctx + p
  wvec = jnp.stack([w_sq, w_sk, w_go, w_gop, bv.astype(f32)], axis=0)  # (5, H)
  scal = jnp.stack([c_score, bg.astype(f32)[0]])                       # (2,)
  wv_t = wv.T.astype(mxu_dtype)                                        # (H, H)
  mask3 = mask.astype(f32).reshape(B, 1, L)

  if tb is None:
    tb = _pick_tb(B, C, L, H)
  assert B % tb == 0, "tb must divide the batch size"
  assert tb == 1 or L % 8 == 0, "batched blocks need L to be a sublane multiple"
  grid = (B // tb,)

  grid_spec = pltpu.PrefetchScalarGridSpec(
      num_scalar_prefetch=0,
      grid=grid,
      in_specs=[
          pl.BlockSpec((tb, C, H), lambda b: (b, 0, 0)),      # p
          pl.BlockSpec((tb, L, H), lambda b: (b, 0, 0)),      # x
          pl.BlockSpec((tb, 1, L), lambda b: (b, 0, 0)),      # mask
          pl.BlockSpec((H, H), lambda b: (0, 0)),             # Wv^T (mxu dtype)
          pl.BlockSpec((5, H), lambda b: (0, 0)),             # packed (H,) rows
          pl.BlockSpec(memory_space=pltpu.MemorySpace.SMEM),  # packed scalars
      ],
      out_specs=pl.BlockSpec((tb, C, H), lambda b: (b, 0, 0)),
  )
  return pl.pallas_call(
      relation_attention_kernel,
      out_shape=jax.ShapeDtypeStruct((B, C, H), f32),
      grid_spec=grid_spec,
      compiler_params=pltpu.CompilerParams(
          dimension_semantics=("parallel",),
          vmem_limit_bytes=32 * 1024 * 1024),
  )(p.astype(f32), x.astype(f32), mask3, wv_t, wvec, scal)


def relation_attention_reference(p, x, mask, params):
  """Pure-JAX transcription of the PyTorch forward (for verification)."""
  wq, bq, wk, bk, wv, bv, ws, bs, wg, bg = params
  B, C, H = p.shape
  L = x.shape[1]
  with jax.default_matmul_precision("float32"):
    q = p @ wq.T + bq
    k = x @ wk.T + bk
    qe = jnp.broadcast_to(q[:, :, None, :], (B, C, L, H))
    ke = jnp.broadcast_to(k[:, None, :, :], (B, C, L, H))
    temp = jnp.concatenate([qe, ke], axis=3)
    score = (temp @ ws.T + bs)[..., 0]                       # (B, C, L)
    inv = 1.0 - jnp.broadcast_to(mask[:, None, :], score.shape)
    score = jnp.where(inv == 1.0, -1000000000.0, score)
    score = jax.nn.softmax(score, axis=2)
    v = x @ wv.T + bv
    out = jnp.einsum('bcl,bld->bcd', score, v) + p
    g = jax.nn.sigmoid(jnp.concatenate([out, p], axis=2) @ wg.T + bg)
    return g * out + (1.0 - g) * p


if __name__ == "__main__":
  B, C, L, H = 4, 8, 8, 32

  key = jax.random.PRNGKey(0)
  ks = jax.random.split(key, 13)
  scale = 0.1
  wq = scale * jax.random.normal(ks[0], (H, H), jnp.float32)
  bq = scale * jax.random.normal(ks[1], (H,), jnp.float32)
  wk = scale * jax.random.normal(ks[2], (H, H), jnp.float32)
  bk = scale * jax.random.normal(ks[3], (H,), jnp.float32)
  wv = scale * jax.random.normal(ks[4], (H, H), jnp.float32)
  bv = scale * jax.random.normal(ks[5], (H,), jnp.float32)
  ws = scale * jax.random.normal(ks[6], (1, 2 * H), jnp.float32)
  bs = scale * jax.random.normal(ks[7], (1,), jnp.float32)
  wg = scale * jax.random.normal(ks[8], (1, 2 * H), jnp.float32)
  bg = scale * jax.random.normal(ks[9], (1,), jnp.float32)
  params = (wq, bq, wk, bk, wv, bv, ws, bs, wg, bg)

  p = jax.random.normal(ks[10], (B, C, H), jnp.float32)
  x = jax.random.normal(ks[11], (B, L, H), jnp.float32)
  # binary key-mask (1 = keep); a couple of batches have masked key positions.
  mask = jnp.ones((B, L), jnp.float32)
  mask = mask.at[0, L - 2:].set(0.0)
  mask = mask.at[2, :3].set(0.0)

  ref = relation_attention_reference(p, x, mask, params)

  # Default path: bf16 MXU operands, f32 accumulation and f32 elementwise.
  out_bf16 = jax.block_until_ready(relation_attention(p, x, mask, params))
  np.testing.assert_allclose(np.asarray(out_bf16), np.asarray(ref),
                             rtol=2e-2, atol=2e-2)

  # Exact-algebra check: same kernel with f32 MXU operands.
  out_f32 = jax.block_until_ready(
      relation_attention(p, x, mask, params, mxu_dtype=jnp.float32))
  np.testing.assert_allclose(np.asarray(out_f32), np.asarray(ref),
                             rtol=1e-2, atol=1e-2)

  print("KERNEL_OK")
</pallas_src>

<mosaic_0001>
module attributes {stable_mosaic.version = 11 : i64} {
  func.func @relation_attention_kernel(%arg0: i32, %arg1: memref<2x8x32xf32, #tpu.memory_space<vmem>>, %arg2: memref<2x8x32xf32, #tpu.memory_space<vmem>>, %arg3: memref<2x1x8xf32, #tpu.memory_space<vmem>>, %arg4: memref<32x32xbf16, #tpu.memory_space<vmem>>, %arg5: memref<5x32xf32, #tpu.memory_space<vmem>>, %arg6: memref<2xf32, #tpu.memory_space<smem>>, %arg7: memref<2x8x32xf32, #tpu.memory_space<vmem>>) attributes {dimension_semantics = [#tpu.dimension_semantics<parallel>], iteration_bounds = array<i64: 2>, scalar_prefetch = 0 : i64, scratch_operands = 0 : i64, tpu.core_type = #tpu.core_type<tc>, window_params = [{transform_indices = @transform_0, window_bounds = array<i64: 2, 8, 32>}, {transform_indices = @transform_1, window_bounds = array<i64: 2, 8, 32>}, {transform_indices = @transform_2, window_bounds = array<i64: 2, 1, 8>}, {pipeline_mode = #tpu.pipeline_mode<synchronous>, transform_indices = @transform_3, window_bounds = array<i64: 32, 32>}, {pipeline_mode = #tpu.pipeline_mode<synchronous>, transform_indices = @transform_4, window_bounds = array<i64: 5, 32>}, {transform_indices = @transform_5, window_bounds = array<i64: 2>}, {transform_indices = @transform_6, window_bounds = array<i64: 2, 8, 32>}]} {
    %c0 = arith.constant 0 : index
    %c0_0 = arith.constant 0 : index
    %c0_1 = arith.constant 0 : index
    %0 = vector.load %arg1[%c0, %c0_0, %c0_1] : memref<2x8x32xf32, #tpu.memory_space<vmem>>, vector<2x8x32xf32>
    %c0_2 = arith.constant 0 : index
    %c0_3 = arith.constant 0 : index
    %c0_4 = arith.constant 0 : index
    %1 = vector.load %arg2[%c0_2, %c0_3, %c0_4] : memref<2x8x32xf32, #tpu.memory_space<vmem>>, vector<2x8x32xf32>
    %c0_5 = arith.constant 0 : index
    %c0_6 = arith.constant 0 : index
    %c0_7 = arith.constant 0 : index
    %2 = vector.load %arg3[%c0_5, %c0_6, %c0_7] : memref<2x1x8xf32, #tpu.memory_space<vmem>>, vector<2x1x8xf32>
    %c0_8 = arith.constant 0 : index
    %c0_9 = arith.constant 0 : index
    %3 = vector.load %arg5[%c0_8, %c0_9] : memref<5x32xf32, #tpu.memory_space<vmem>>, vector<1x32xf32>
    %4 = vector.shape_cast %3 : vector<1x32xf32> to vector<32xf32>
    %c1 = arith.constant 1 : index
    %c0_10 = arith.constant 0 : index
    %5 = vector.load %arg5[%c1, %c0_10] : memref<5x32xf32, #tpu.memory_space<vmem>>, vector<1x32xf32>
    %6 = vector.shape_cast %5 : vector<1x32xf32> to vector<32xf32>
    %c2 = arith.constant 2 : index
    %c0_11 = arith.constant 0 : index
    %7 = vector.load %arg5[%c2, %c0_11] : memref<5x32xf32, #tpu.memory_space<vmem>>, vector<1x32xf32>
    %8 = vector.shape_cast %7 : vector<1x32xf32> to vector<32xf32>
    %c3 = arith.constant 3 : index
    %c0_12 = arith.constant 0 : index
    %9 = vector.load %arg5[%c3, %c0_12] : memref<5x32xf32, #tpu.memory_space<vmem>>, vector<1x32xf32>
    %10 = vector.shape_cast %9 : vector<1x32xf32> to vector<32xf32>
    %c4 = arith.constant 4 : index
    %c0_13 = arith.constant 0 : index
    %11 = vector.load %arg5[%c4, %c0_13] : memref<5x32xf32, #tpu.memory_space<vmem>>, vector<1x32xf32>
    %12 = vector.shape_cast %11 : vector<1x32xf32> to vector<32xf32>
    %c0_14 = arith.constant 0 : index
    %13 = memref.load %arg6[%c0_14] : memref<2xf32, #tpu.memory_space<smem>>
    %c1_15 = arith.constant 1 : index
    %14 = memref.load %arg6[%c1_15] : memref<2xf32, #tpu.memory_space<smem>>
    %15 = vector.shape_cast %1 : vector<2x8x32xf32> to vector<16x32xf32>
    %16 = arith.truncf %15 : vector<16x32xf32> to vector<16x32xbf16>
    %c0_16 = arith.constant 0 : index
    %c0_17 = arith.constant 0 : index
    %17 = vector.load %arg4[%c0_16, %c0_17] : memref<32x32xbf16, #tpu.memory_space<vmem>>, vector<32x32xbf16>
    %cst = arith.constant dense<0.000000e+00> : vector<16x32xf32>
    %18 = tpu.matmul %16, %17, %cst {dimension_numbers = #tpu.dot_dimension_numbers<[1], [0], [0], [1], [0, 0, 1, 1], [], []>} : vector<16x32xbf16>, vector<32x32xbf16>, vector<16x32xf32> -> vector<16x32xf32>
    %19 = vector.shape_cast %12 : vector<32xf32> to vector<1x32xf32>
    %20 = vector.broadcast %19 : vector<1x32xf32> to vector<16x32xf32>
    %21 = arith.addf %18, %20 : vector<16x32xf32>
    %22 = vector.shape_cast %21 : vector<16x32xf32> to vector<2x8x32xf32>
    %23 = vector.shape_cast %4 : vector<32xf32> to vector<1x1x32xf32>
    %24 = vector.broadcast %23 : vector<1x1x32xf32> to vector<2x8x32xf32>
    %25 = arith.mulf %0, %24 : vector<2x8x32xf32>
    %cst_18 = arith.constant dense<0.000000e+00> : vector<2x8xf32>
    %26 = vector.multi_reduction <add>, %25, %cst_18 [2] : vector<2x8x32xf32> to vector<2x8xf32>
    %27 = vector.shape_cast %26 : vector<2x8xf32> to vector<2x8x1xf32>
    %28 = vector.shape_cast %6 : vector<32xf32> to vector<1x1x32xf32>
    %29 = vector.broadcast %28 : vector<1x1x32xf32> to vector<2x8x32xf32>
    "tpu.trace_start"() <{level = 10 : i32, message = "bch,blh->bcl"}> : () -> ()
    %cst_19 = arith.constant dense<0.000000e+00> : vector<2x8x8xf32>
    %30 = tpu.matmul %29, %1, %cst_19 {dimension_numbers = #tpu.dot_dimension_numbers<[2], [2], [1], [1], [0, 0, 0, 1, 1, 1], [0], [0]>} : vector<2x8x32xf32>, vector<2x8x32xf32>, vector<2x8x8xf32> -> vector<2x8x8xf32>
    "tpu.trace_stop"() : () -> ()
    %31 = vector.broadcast %27 : vector<2x8x1xf32> to vector<2x8x8xf32>
    %32 = arith.addf %31, %30 : vector<2x8x8xf32>
    %33 = vector.broadcast %13 : f32 to vector<2x8x8xf32>
    %34 = arith.addf %32, %33 : vector<2x8x8xf32>
    %cst_20 = arith.constant 5.000000e-01 : f32
    %35 = vector.broadcast %cst_20 : f32 to vector<2x1x8xf32>
    %36 = arith.cmpf ogt, %2, %35 : vector<2x1x8xf32>
    %cst_21 = arith.constant -1.000000e+09 : f32
    %37 = vector.shape_cast %36 : vector<2x1x8xi1> to vector<2x1x8xi1>
    %38 = vector.broadcast %37 : vector<2x1x8xi1> to vector<2x8x8xi1>
    %39 = vector.broadcast %cst_21 : f32 to vector<2x8x8xf32>
    %40 = arith.select %38, %34, %39 : vector<2x8x8xi1>, vector<2x8x8xf32>
    %cst_22 = arith.constant dense<0xFF800000> : vector<2x8xf32>
    %41 = vector.multi_reduction <maximumf>, %40, %cst_22 [2] : vector<2x8x8xf32> to vector<2x8xf32>
    %42 = vector.shape_cast %41 : vector<2x8xf32> to vector<2x8x1xf32>
    %43 = vector.broadcast %42 : vector<2x8x1xf32> to vector<2x8x8xf32>
    %44 = arith.subf %40, %43 : vector<2x8x8xf32>
    %45 = math.exp %44 : vector<2x8x8xf32>
    %cst_23 = arith.constant dense<0.000000e+00> : vector<2x8xf32>
    %46 = vector.multi_reduction <add>, %45, %cst_23 [2] : vector<2x8x8xf32> to vector<2x8xf32>
    %47 = vector.shape_cast %46 : vector<2x8xf32> to vector<2x8x1xf32>
    %48 = tpu.reciprocal %47 {approx = true} : vector<2x8x1xf32> -> vector<2x8x1xf32>
    %49 = vector.broadcast %48 : vector<2x8x1xf32> to vector<2x8x8xf32>
    %50 = arith.mulf %45, %49 : vector<2x8x8xf32>
    %51 = arith.truncf %50 : vector<2x8x8xf32> to vector<2x8x8xbf16>
    %52 = arith.truncf %22 : vector<2x8x32xf32> to vector<2x8x32xbf16>
    "tpu.trace_start"() <{level = 10 : i32, message = "bcl,blh->bch"}> : () -> ()
    %cst_24 = arith.constant dense<0.000000e+00> : vector<2x8x32xf32>
    %53 = tpu.matmul %51, %52, %cst_24 {dimension_numbers = #tpu.dot_dimension_numbers<[2], [1], [1], [2], [0, 0, 0, 1, 1, 2], [0], [0]>} : vector<2x8x8xbf16>, vector<2x8x32xbf16>, vector<2x8x32xf32> -> vector<2x8x32xf32>
    "tpu.trace_stop"() : () -> ()
    %54 = vector.shape_cast %8 : vector<32xf32> to vector<1x1x32xf32>
    %55 = vector.broadcast %54 : vector<1x1x32xf32> to vector<2x8x32xf32>
    %56 = arith.mulf %53, %55 : vector<2x8x32xf32>
    %cst_25 = arith.constant dense<0.000000e+00> : vector<2x8xf32>
    %57 = vector.multi_reduction <add>, %56, %cst_25 [2] : vector<2x8x32xf32> to vector<2x8xf32>
    %58 = vector.shape_cast %57 : vector<2x8xf32> to vector<2x8x1xf32>
    %59 = vector.shape_cast %10 : vector<32xf32> to vector<1x1x32xf32>
    %60 = vector.broadcast %59 : vector<1x1x32xf32> to vector<2x8x32xf32>
    %61 = arith.mulf %0, %60 : vector<2x8x32xf32>
    %cst_26 = arith.constant dense<0.000000e+00> : vector<2x8xf32>
    %62 = vector.multi_reduction <add>, %61, %cst_26 [2] : vector<2x8x32xf32> to vector<2x8xf32>
    %63 = vector.shape_cast %62 : vector<2x8xf32> to vector<2x8x1xf32>
    %64 = arith.addf %58, %63 : vector<2x8x1xf32>
    %65 = vector.broadcast %14 : f32 to vector<2x8x1xf32>
    %66 = arith.addf %64, %65 : vector<2x8x1xf32>
    %67 = arith.negf %66 : vector<2x8x1xf32>
    %68 = math.exp %67 : vector<2x8x1xf32>
    %cst_27 = arith.constant 1.000000e+00 : f32
    %69 = vector.broadcast %cst_27 : f32 to vector<2x8x1xf32>
    %70 = arith.addf %69, %68 : vector<2x8x1xf32>
    %71 = arith.divf %69, %70 : vector<2x8x1xf32>
    %72 = vector.broadcast %71 : vector<2x8x1xf32> to vector<2x8x32xf32>
    %73 = arith.mulf %72, %53 : vector<2x8x32xf32>
    %74 = arith.addf %0, %73 : vector<2x8x32xf32>
    %c0_28 = arith.constant 0 : index
    %c0_29 = arith.constant 0 : index
    %c0_30 = arith.constant 0 : index
    %75 = vector.load %arg7[%c0_28, %c0_29, %c0_30] : memref<2x8x32xf32, #tpu.memory_space<vmem>>, vector<2x8x32xf32>
    tpu.vector_store %arg7[%c0_28, %c0_29, %c0_30], %74 {strides = array<i32>} : memref<2x8x32xf32, #tpu.memory_space<vmem>>, vector<2x8x32xf32>,
    return
  }
  func.func @transform_0(%arg0: i32) -> (i32, i32, i32) {
    %c0_i32 = arith.constant 0 : i32
    %c0_i32_0 = arith.constant 0 : i32
    %c0_i32_1 = arith.constant 0 : i32
    return %arg0, %c0_i32, %c0_i32_0 : i32, i32, i32
  }
  func.func @transform_1(%arg0: i32) -> (i32, i32, i32) {
    %c0_i32 = arith.constant 0 : i32
    %c0_i32_0 = arith.constant 0 : i32
    %c0_i32_1 = arith.constant 0 : i32
    return %arg0, %c0_i32, %c0_i32_0 : i32, i32, i32
  }
  func.func @transform_2(%arg0: i32) -> (i32, i32, i32) {
    %c0_i32 = arith.constant 0 : i32
    %c0_i32_0 = arith.constant 0 : i32
    %c0_i32_1 = arith.constant 0 : i32
    return %arg0, %c0_i32, %c0_i32_0 : i32, i32, i32
  }
  func.func @transform_3(%arg0: i32) -> (i32, i32) {
    %c0_i32 = arith.constant 0 : i32
    %c0_i32_0 = arith.constant 0 : i32
    %c0_i32_1 = arith.constant 0 : i32
    return %c0_i32, %c0_i32_0 : i32, i32
  }
  func.func @transform_4(%arg0: i32) -> (i32, i32) {
    %c0_i32 = arith.constant 0 : i32
    %c0_i32_0 = arith.constant 0 : i32
    %c0_i32_1 = arith.constant 0 : i32
    return %c0_i32, %c0_i32_0 : i32, i32
  }
  func.func @transform_5(%arg0: i32) -> i32 {
    %c0_i32 = arith.constant 0 : i32
    %c0_i32_0 = arith.constant 0 : i32
    return %c0_i32 : i32
  }
  func.func @transform_6(%arg0: i32) -> (i32, i32, i32) {
    %c0_i32 = arith.constant 0 : i32
    %c0_i32_0 = arith.constant 0 : i32
    %c0_i32_1 = arith.constant 0 : i32
    return %arg0, %c0_i32, %c0_i32_0 : i32, i32, i32
  }
}

</mosaic_0001>

<bundles_post_ra>
// kernel: tpu_custom_call.1
= control target key start
LH: loop header
LB: loop body
LE: loop exit
PB: predicated region body
PF: predicated region fallthrough
CT: control target
= control target key end

     0   :  { %s1817_s0 = inlined_call_operand.hbm [shape: f32[4,8,32], index: 0, kind: input, shape index: {}]   ;;  %s1818_s1 = inlined_call_operand.hbm [shape: f32[4,8,32], index: 1, kind: input, shape index: {}]   ;;  %s1819_s2 = inlined_call_operand.hbm [shape: f32[4,1,8], index: 2, kind: input, shape index: {}]   ;;  %s1820_s3 = inlined_call_operand.hbm [shape: bf16[32,32], index: 3, kind: input, shape index: {}]   ;;  %s1821_s4 = inlined_call_operand.hbm [shape: f32[5,32], index: 4, kind: input, shape index: {}]   ;;  %s1822_s5 = inlined_call_operand.vmem [shape: f32[2], index: 5, kind: input, shape index: {}]   ;;  %s1823_s6 = inlined_call_operand.hbm [shape: f32[4,8,32], index: 6, kind: output, shape index: {}]  }
   0x1   :  { %1839 = sst [smem:[#allocation21_spill]] %s1817_s0 }
   0x2   :  { %1840 = sst [smem:[#allocation22_spill]] %s1818_s1 }
   0x3   :  { %11 = vsyncpa [#allocation3], 0 }
   0x4   :  { %13 = vsyncpa [#allocation3 + $0x1], 0 }
   0x5   :  { %14 = vsyncpa [#allocation7], 0 }
   0x6   :  { %16 = vsyncpa [#allocation7 + $0x1], 0 }
   0x7   :  { %17 = vsyncpa [#allocation10], 0 }
   0x8   :  { %18 = vsyncpa [#allocation5], 0 }
   0x9   :  { %19 = vsyncpa [#allocation4], 0 }
   0xa   :  { %21 = vsyncpa [#allocation4 + $0x1], 0  ;;  %s1474_s21 = smov 0   ;;  %s1476_s22 = smov 0  }
   0xb   :  { %s1478_s23 = smov 0   ;;  %s1480_s24 = smov 0  }
   0xc LB: > { %1841 = sst [smem:[#allocation19_spill]] %s1415_s23  ;;  %s1495_s25 = sadd.s32 4294967295, %s1419_s24   ;;  %s1419_s24 = sphi %s1480_s24, %s1876_s24   ;;  %s1415_s23 = sphi %s1478_s23, %s1873_s23   ;;  %s1411_s22 = sphi %s1476_s22, %s1875_s22   ;;  %s1407_s21 = sphi %s1474_s21, %s1874_s21  }
   0xd   : > { %s986_s26 = sadd.s32 4294967294, %s1419_s24   ;;  %s1499_s27 = sadd.s32 1, %s1419_s24  }
   0xe   : > { %s34_s28 = sadd.s32 1, %s1415_s23  ;;  %s31_s29 = ssub.s32 %s1419_s24, %s1499_s27 }
   0xf   : > { %p41_p0 = scmp.ne.s32.totalorder %s1415_s23, %s1411_s22  ;;  %p32_p1 = scmp.eq.s32.totalorder %s31_s29, 0 }
  0x10   : > { %p42_p2 = scmp.eq.s32.totalorder %s1419_s24, 0  ;;  %p47_p3 = scmp.ne.s32.totalorder %s1411_s22, %s1407_s21 }
  0x11   : > { %p1824_p4 = scmp.eq.s32.totalorder %s1495_s25, 0  ;;  %p186_p7 = scmp.eq.s32.totalorder %s1495_s25, 1 }
  0x12   : > { %s1511_s30 = scalar_select %p32_p1, %s1415_s23, %s34_s28  }
  0x13   : > { %p1513_p5 = por %p42_p2, %p41_p0  ;;  %p1519_p6 = por %p1824_p4, %p47_p3 }
  0x14   : > { %1842 = sst [smem:[#allocation20_spill]] %s1511_s30  ;;  %p192_p8 = scmp.eq.s32.totalorder %s986_s26, 1 }
  0x15   : > { %s1844_s8 = scalar_select %p1519_p6, 1, 0 }
  0x16   : > { %p987_p9 = scmp.ge.s32.totalorder %s1419_s24, 1  ;;  %p199_p10 = scmp.lt.s32.totalorder %s1419_s24, 3 }
  0x17   : > { %p1526_p11 = por %p186_p7, %p41_p0  ;;  %p1530_p12 = por %p192_p8, %p47_p3 }
  0x18   : > { %p1534_p13 = pnand %p987_p9, %p199_p10  ;;  %s1421_s12 = smov [#allocation9]  }
  0x19   : > { %s1845_s9 = scalar_select %p1526_p11, 1, 0 }
  0x1a   : > { %s1846_s10 = scalar_select %p1530_p12, 1, 0 }
  0x1b   : > { %s1847_s11 = scalar_select %p1534_p13, 1, 0 }
  0x1c   : > { %p1096_p1 = pneg %p1534_p13  ;;  %s211_s13 = sshll.u32 %s1421_s12, 4  ;;  %s212_s13 = int_to_ptr.vmem [resolvable:$true] %s211_s13 }
  0x1d   : > { %p1123_p3 = scmp.lt.s32.totalorder %s1419_s24, 2  ;;  %s1549_s15 = sand.u32 1, %s1415_s23  }
  0x1e   : > { %p1542_p2 = pnand %p1096_p1, %p1824_p4  ;;  %s1203_s17 = scalar_lea.vmem %s212_s13, 256 }
  0x1f   : > { %p1204_p8 = scmp.ne.s32.totalorder %s212_s13, %s1203_s17  ;;  %p1211_p1 = scmp.lt.s32.totalorder %s212_s13, %s212_s13 }
  0x20   : > { %s1848_s14 = scalar_select %p1542_p2, 1, 0 }
  0x21   : > { %p1828_p7 = pneg %p1542_p2  ;;  %p1212_p4 = scmp.lt.s32.totalorder %s1203_s17, %s1203_s17 }
  0x23   : > { %p1206_p9 = pnand %p1204_p8, %p1828_p7  ;;  %p1213_p12 = por %p1212_p4, %p1211_p1 }
  0x25   : > { %p1207_p10 = pneg %p1206_p9 }
  0x27   : > { %p1214_p11 = pnand %p1213_p12, %p1207_p10 }
  0x29   : > { %1217 = shalt.err (!%p1214_p11)
}
  0x2a   : > { %s1422_s18 = smov 64   ;;  %s1423_s19 = smov 4  }
  0x2b   : > { %1099 = dma.hbm_to_vmem [thread:$0]  (!%p1542_p2), %s1820_s3, 256, %s212_s13, [#allocation10], %s1422_s18, %s1422_s18, %s1423_s19  }
  0x2c   : > { %s1827_s28 = sshll.u32 %s1419_s24, 8  ;;  %p1567_p4 = pnand %p1123_p3, %p1513_p5 }
  0x2d   : > { %s268_s12 = sand.u32 1, %s1419_s24   ;;  %s1850_s1 = sld [smem:[#allocation22_spill]] }
  0x2e   : > { %s1849_s29 = scalar_select %p1567_p4, 1, 0 }
  0x2f   : > { %s1851_s23 = sshll.u32 %s1549_s15, 4  ;;  %s1583_s7 = scalar_lea.sflag [#allocation7], %s268_s12 }
  0x30   : > { %s272_s13 = scalar_lea.vmem [#allocation6], %s1851_s23  ;;  %p1589_p11 = pneg %p1567_p4 }
  0x31   : > { %s279_s18 = sshll.u32 %s272_s13, 4  ;;  %s1581_s18 = int_to_ptr.vmem [resolvable:$true] %s279_s18 }
  0x32   : > { %s1852_s20 = scalar_select %p1589_p11, 1, 0 }
  0x33   : > { %s1577_s30 = scalar_lea.hbm %s1850_s1, %s1827_s28  ;;  %s1223_s23 = scalar_lea.hbm %s1850_s1, 512 }
  0x34   : > { %s1218_s19 = scalar_lea.hbm %s1577_s30, 256  ;;  %p1224_p8 = scmp.lt.s32.totalorder %s1577_s30, %s1850_s1 }
  0x35   : > { %p1219_p5 = scmp.ne.s32.totalorder %s1577_s30, %s1218_s19  ;;  %p1225_p9 = scmp.lt.s32.totalorder %s1223_s23, %s1218_s19 }
  0x37   : > { %p1221_p12 = pnand %p1589_p11, %p1219_p5  ;;  %p1226_p10 = por %p1225_p9, %p1224_p8 }
  0x39   : > { %p1222_p3 = pneg %p1221_p12 }
  0x3b   : > { %p1227_p1 = pnand %p1226_p10, %p1222_p3 }
  0x3d   : > { %1230 = shalt.err (!%p1227_p1)
}
  0x3e   : > { %s1231_s12 = scalar_lea.vmem %s1581_s18, 256  ;;  %s1424_s28 = smov [#allocation6]  }
  0x3f   : > { %p1232_p0 = scmp.ne.s32.totalorder %s1581_s18, %s1231_s12  ;;  %s1236_s16 = sshll.u32 %s1424_s28, 4  ;;  %s1237_s16 = int_to_ptr.vmem [resolvable:$false] %s1236_s16 }
  0x40   : > { %s1238_s26 = scalar_lea.vmem %s1237_s16, 512  ;;  %p1239_p7 = scmp.lt.s32.totalorder %s1581_s18, %s1237_s16 }
  0x41   : > { %p1234_p5 = pnand %p1232_p0, %p1589_p11  ;;  %p1240_p6 = scmp.lt.s32.totalorder %s1238_s26, %s1231_s12 }
  0x43   : > { %p1235_p12 = pneg %p1234_p5  ;;  %p1241_p13 = por %p1240_p6, %p1239_p7 }
  0x45   : > { %p1242_p2 = pnand %p1241_p13, %p1235_p12 }
  0x47   : > { %1245 = shalt.err (!%p1242_p2)
}
  0x48   : > { %s1837_s19 = smov 128   ;;  %s1838_s23 = smov 8  }
  0x49   : > { %1112 = dma.hbm_to_vmem [thread:$0]  (!%p1567_p4), %s1577_s30, 256, %s1581_s18, %s1583_s7, %s1837_s19, %s1837_s19, %s1838_s23  }
  0x4a   : > { %s1427_s28 = smov [#allocation11]   ;;  %s236_s12 = sshll.u32 %s1822_s5, 4  ;;  %s237_s12 = int_to_ptr.vmem [resolvable:$true] %s236_s12 }
  0x4b   : > { %s225_s17 = sshll.u32 %s1427_s28, 4  ;;  %p1853_p13 = scmp.ne.s32.totalorder %s1848_s14, 0  ;;  %s226_s17 = int_to_ptr.vmem [resolvable:$true] %s225_s17 }
  0x4c   : > { %s1257_s26 = scalar_lea.vmem %s226_s17, 128  ;;  %p1265_p3 = scmp.lt.s32.totalorder %s226_s17, %s226_s17 }
  0x4d   : > { %p1258_p6 = scmp.ne.s32.totalorder %s226_s17, %s1257_s26  ;;  %p1854_p2 = pneg %p1853_p13 }
  0x4e   : > { %p1266_p8 = scmp.lt.s32.totalorder %s1257_s26, %s1257_s26 }
  0x4f   : > { %p1260_p0 = pnand %p1258_p6, %p1854_p2 }
  0x50   : > { %p1267_p9 = por %p1266_p8, %p1265_p3 }
  0x51   : > { %p1261_p7 = pneg %p1260_p0 }
  0x53   : > { %p1268_p10 = pnand %p1267_p9, %p1261_p7 }
  0x55   : > { %1271 = shalt.err (!%p1268_p10)
}
  0x56   : > { %1102 = dma.hbm_to_vmem [thread:$0]  (!%p1853_p13), %s1821_s4, 128, %s226_s17, [#allocation10]  }
  0x57   : > { %s1272_s28 = scalar_lea.vmem %s237_s12, 16  ;;  %p1855_p5 = pmov %p1854_p2 }
  0x58   : > { %p1273_p1 = scmp.ne.s32.totalorder %s237_s12, %s1272_s28  ;;  %p1280_p6 = scmp.lt.s32.totalorder %s237_s12, %s237_s12 }
  0x59   : > { %p1281_p2 = scmp.lt.s32.totalorder %s1272_s28, %s1272_s28 }
  0x5a   : > { %p1275_p12 = pnand %p1273_p1, %p1855_p5 }
  0x5b   : > { %p1282_p0 = por %p1281_p2, %p1280_p6 }
  0x5c   : > { %p1276_p4 = pneg %p1275_p12 }
  0x5e   : > { %p1283_p11 = pnand %p1282_p0, %p1276_p4 }
  0x60   : > { %1286 = shalt.err (!%p1283_p11)
}
  0x61   : > { %s1428_s13 = smov [#allocation12]   ;;  %s1856_s17 = sshll.u32 %s1419_s24, 8 }
  0x62   : > { %1105 = dma.vmem_to_smem (!%p1853_p13), %s237_s12, 16, %s1428_s13, [#allocation5]  }
  0x63   : > { %s1857_s0 = sld [smem:[#allocation21_spill]]  ;;  %s1858_s18 = sshll.u32 %s1549_s15, 4 }
  0x64   : > { %s251_s28 = scalar_lea.vmem [#allocation2], %s1858_s18  ;;  %s998_s23 = sshll.u32 %s1549_s15, 1 }
  0x65   : > { %s258_s19 = sshll.u32 %s251_s28, 4  ;;  %s248_s14 = scalar_lea.sflag [#allocation3], %s1549_s15  ;;  %s1641_s19 = int_to_ptr.vmem [resolvable:$true] %s258_s19 }
  0x66   : > { %p1859_p11 = scmp.ne.s32.totalorder %s1852_s20, 0 }
  0x69   : > { %s1636_s30 = scalar_lea.hbm %s1857_s0, %s1856_s17  ;;  %s1292_s17 = scalar_lea.hbm %s1857_s0, 512 }
  0x6a   : > { %s1287_s1 = scalar_lea.hbm %s1636_s30, 256  ;;  %p1293_p3 = scmp.lt.s32.totalorder %s1636_s30, %s1857_s0 }
  0x6b   : > { %p1288_p4 = scmp.ne.s32.totalorder %s1636_s30, %s1287_s1  ;;  %p1294_p8 = scmp.lt.s32.totalorder %s1292_s17, %s1287_s1 }
  0x6d   : > { %p1290_p13 = pnand %p1288_p4, %p1859_p11  ;;  %p1295_p9 = por %p1294_p8, %p1293_p3 }
  0x6f   : > { %p1291_p7 = pneg %p1290_p13 }
  0x71   : > { %p1296_p10 = pnand %p1295_p9, %p1291_p7 }
  0x73   : > { %1299 = shalt.err (!%p1296_p10)
}
  0x74   : > { %s1300_s18 = scalar_lea.vmem %s1641_s19, 256  ;;  %s1429_s28 = smov [#allocation2]  }
  0x75   : > { %p1301_p1 = scmp.ne.s32.totalorder %s1641_s19, %s1300_s18  ;;  %s1305_s12 = sshll.u32 %s1429_s28, 4  ;;  %s1306_s12 = int_to_ptr.vmem [resolvable:$false] %s1305_s12 }
  0x76   : > { %s1307_s13 = scalar_lea.vmem %s1306_s12, 512  ;;  %p1308_p6 = scmp.lt.s32.totalorder %s1641_s19, %s1306_s12 }
  0x77   : > { %p1303_p5 = pnand %p1301_p1, %p1859_p11  ;;  %p1309_p2 = scmp.lt.s32.totalorder %s1307_s13, %s1300_s18 }
  0x79   : > { %p1304_p12 = pneg %p1303_p5  ;;  %p1310_p0 = por %p1309_p2, %p1308_p6 }
  0x7b   : > { %p1311_p4 = pnand %p1310_p0, %p1304_p12 }
  0x7d   : > { %1314 = shalt.err (!%p1311_p4)
}
  0x7e   : > { %p1860_p13 = scmp.ne.s32.totalorder %s1849_s29, 0  ;;  %s1861_s1 = smov 8  }
  0x7f   : > { %s1862_s17 = smov 128   ;;  %s1033_s16 = sshll.u32 %s1419_s24, 5 }
  0x80   : > { %1109 = dma.hbm_to_vmem [thread:$0]  (!%p1860_p13), %s1636_s30, 256, %s1641_s19, %s248_s14, %s1862_s17, %s1862_s17, %s1861_s1  }
  0x81   : > { %s293_s26 = scalar_lea.vmem [#allocation8], %s998_s23  ;;  %s1673_s13 = scalar_lea.hbm %s1819_s2, %s1033_s16 }
  0x82   : > { %s300_s28 = sshll.u32 %s293_s26, 4  ;;  %s1315_s0 = scalar_lea.hbm %s1673_s13, 32  ;;  %s1675_s28 = int_to_ptr.vmem [resolvable:$true] %s300_s28 }
  0x83   : > { %p1316_p7 = scmp.ne.s32.totalorder %s1673_s13, %s1315_s0  ;;  %s1320_s15 = scalar_lea.hbm %s1819_s2, 64 }
  0x84   : > { %p1321_p9 = scmp.lt.s32.totalorder %s1673_s13, %s1819_s2  ;;  %p1322_p10 = scmp.lt.s32.totalorder %s1320_s15, %s1315_s0 }
  0x85   : > { %p1318_p3 = pnand %p1316_p7, %p1859_p11 }
  0x86   : > { %p1323_p1 = por %p1322_p10, %p1321_p9 }
  0x87   : > { %p1319_p8 = pneg %p1318_p3 }
  0x89   : > { %p1324_p5 = pnand %p1323_p1, %p1319_p8 }
  0x8b   : > { %1327 = shalt.err (!%p1324_p5)
}
  0x8c   : > { %s1328_s1 = scalar_lea.vmem %s1675_s28, 32  ;;  %s1430_s17 = smov [#allocation8]  }
  0x8d   : > { %p1329_p12 = scmp.ne.s32.totalorder %s1675_s28, %s1328_s1  ;;  %s1333_s16 = sshll.u32 %s1430_s17, 4  ;;  %s1334_s16 = int_to_ptr.vmem [resolvable:$false] %s1333_s16 }
  0x8e   : > { %s1335_s26 = scalar_lea.vmem %s1334_s16, 64  ;;  %p1336_p0 = scmp.lt.s32.totalorder %s1675_s28, %s1334_s16 }
  0x8f   : > { %p1331_p6 = pnand %p1329_p12, %p1859_p11  ;;  %p1337_p4 = scmp.lt.s32.totalorder %s1335_s26, %s1328_s1 }
  0x91   : > { %p1332_p2 = pneg %p1331_p6  ;;  %p1338_p7 = por %p1337_p4, %p1336_p0 }
  0x93   : > { %p1339_p3 = pnand %p1338_p7, %p1332_p2 }
  0x95   : > { %1342 = shalt.err (!%p1339_p3)
}
  0x96   : > { %s1431_s0 = smov 16   ;;  %s1432_s12 = smov 1  }
  0x97   : > { %1115 = dma.hbm_to_vmem [thread:$0]  (!%p1860_p13), %s1673_s13, 32, %s1675_s28, %s1583_s7, %s1431_s0, %s1431_s0, %s1432_s12  }
  0x98   : > { %p1863_p11 = scmp.ne.s32.totalorder %s1847_s11, 0 }
  0x99   : > { %s1701_s20 = sand.u32 (!%p1863_p11), 1, %s1411_s22   ;;  %p1864_p8 = scmp.ne.s32.totalorder (!%p1863_p11), %s1844_s8, 0 }
  0x9a   : > { %312 = sbr.rel (%p1863_p11) target bundleno = 1085 (0x43d), region = 44  ;;  %s1704_s18 = sshll.u32 (!%p1863_p11), %s1701_s20, 4 }
  0x9b   : > { %s315_s19 = scalar_lea.sflag (!%p1863_p11), [#allocation3], %s1701_s20  ;;  %s318_s30 = scalar_lea.vmem (!%p1863_p11), [#allocation2], %s1704_s18 }
  0x9f   : > { %1386 = dma.done.wait (%p1864_p8), %s315_s19, 256  }
  0xa0   : > { %1388 = vsyncadd (%p1864_p8), %s315_s19, 4294967040  ;;  %s323_s11 = sand.u32 1, %s1495_s25   ;;  %s327_s7 = scalar_lea.vmem [#allocation6], %s1704_s18 }
  0xa1   : > { %s324_s29 = scalar_lea.sflag [#allocation7], %s323_s11 }
  0xa2   : > { %1390 = dma.done.wait (%p1864_p8), %s324_s29, 288  }
  0xa3   : > { %1392 = vsyncadd (%p1864_p8), %s324_s29, 4294967008  ;;  %s1004_s28 = sshll.u32 %s1701_s20, 1  ;;  %p1865_p13 = scmp.eq.s32.totalorder %s1495_s25, 0 }
  0xa4   : > { %s1719_s13 = scalar_lea.vmem [#allocation8], %s1004_s28 }
  0xa5   : > { %1394 = dma.done.wait (%p1865_p13), [#allocation10], 384   ;;  %p1866_p9 = pmov %p1865_p13 }
  0xa7   : > { %1396 = vsyncadd (%p1866_p9), [#allocation10], 4294966912  ;;  %p1867_p10 = pmov %p1866_p9 }
  0xa8   : > { %p1868_p1 = pmov %p1866_p9 }
  0xa9   : > { %1398 = dma.done.wait (%p1867_p10), [#allocation5], 16  }
  0xaa   : > { %1400 = vsyncadd (%p1868_p1), [#allocation5], 4294967280 }
  0xab   : > { %353 = sfence }
  0xac   : > { %v395_v0 = vld [vmem:[%s327_s7] sm:$0xff]  ;;  %v396_v1 = vld [vmem:[%s327_s7 + $0x8] sm:$0xff]  ;;  %vm427_vm0 = vcmask 261120   ;;  %v1433_v3 = vmov 0.0   ;;  %vm1434_vm1 = vmmov 0   ;;  %v646_v14 = vlaneseq  ;;  %s404_s8 = sld [smem:[#allocation12]] }
  0xad   : > { %v1729_v2 = vld [vmem:[%s318_s30] sm:$0xff]  ;;  %1054 = vmatprep.subr.mxu1 %v1433_v3  ;;  %v406_v4 = vpack.c.bf16 %v396_v1, %v395_v0  ;;  %1056 = vmatprep.mubr.msk.f32.mxu1 %vm1434_vm1, %v1433_v3  ;;  %v1732_v7 = vld [vmem:[%s318_s30 + $0x8] sm:$0xff]  ;;  %v1435_v19 = vmov 0   ;;  %vm658_vm5 = vcmask 64512   ;;  %vm688_vm7 = vcmask 1043456   ;;  %s1009_s15 = sld [smem:[#allocation12 + $0x1]] }
  0xae   : > { %v1015_v5 = vld [vmem:[#allocation11 + $0x1] ss:$0 sm:$0xff]  ;;  %v1014_v6 = vld [vmem:[#allocation11] ss:$0 sm:$0xff]  ;;  %1055 = vmatpush3.xpose.msk.msra.mxu1 %vm427_vm0, %v395_v0  ;;  %1046 = vmatprep.subr.bf16.mxu0 %v1433_v3  ;;  %v1174_v12 = vld [vmem:[#allocation9 + $0x8] sm:$0xff]   ;;  %v647_v16 = vshrl.u32 %v646_v14, 7 }
  0xaf   : > { %v476_v8 = vmul.f32 %v1014_v6, %v1729_v2  ;;  %v477_v9 = vmul.f32 %v1014_v6, %v1732_v7  ;;  %1059 = vmatprep.subr.mxu1 %v1433_v3  ;;  %1050 = vmatprep.mubr.msk.bf16.mxu0 %vm1434_vm1, %v1433_v3  ;;  %v1175_v13 = vld [vmem:[#allocation9] sm:$0xff]   ;;  %v397_v15 = vld [vmem:[%s1719_s13] sm:$0x1]  ;;  %v398_v17 = vld [vmem:[%s1719_s13 + $0x1] sm:$0x1]  ;;  %s1034_s23 = sshll.u32 %s1495_s25, 8 }
  0xb0   : > { %1047 = vmatpush3.bf16.msra.mxu0 %v1174_v12  ;;  %vm642_vm2 = vcmp.gt.f32.partialorder %v397_v15, 0.5  ;;  %v648_v18 = vsub.s32 0, %v647_v16  ;;  %vm643_vm3 = vcmp.gt.f32.partialorder %v398_v17, 0.5  ;;  %v1010_v39 = vld [vmem:[#allocation11 + $0x4] ss:$0 sm:$0xff]  ;;  %s387_s14 = scalar_lea.vmem [#allocation13], %s1704_s18  ;;  %s1770_s26 = scalar_lea.hbm %s1823_s6, %s1034_s23 }
  0xb1   : > { %v478_v10 = vsel %vm427_vm0, %v476_v8, 0.0  ;;  %1057 = vmatmul.mubr.msk.f32.vlgmr.msra.gmra.mxu1 %vm427_vm0, %v1015_v5  ;;  %v481_v11 = vsel %vm427_vm0, %v477_v9, 0.0  ;;  %1048 = vmatprep.subr.bf16.mxu0 %v1433_v3  ;;  %v644_v20 = vsel %vm642_vm2, 1, %v1435_v19  ;;  %v645_v23 = vsel %vm643_vm3, 1, %v1435_v19  ;;  %v1023_v6 = vld [vmem:[#allocation11 + $0x3] ss:$0 sm:$0xff] }
  0xb2   : > { %479 = vadd.xlane.f32.xlu0 %v478_v10  ;;  %1060 = vmatpush3.xpose.msk.msra.mxu1 %vm427_vm0, %v396_v1  ;;  %v649_v22 = vrot.slane %v644_v20, %v648_v18  ;;  %v639_v25 = vstv %s404_s8  ;;  %v653_v29 = vrot.slane %v645_v23, %v648_v18  ;;  %v794_v10 = vmul.f32 %v1023_v6, %v1729_v2  ;;  %s839_s1 = sshll.u32 %s387_s14, 4  ;;  %s826_s25 = scalar_lea.sflag [#allocation4], %s1701_s20  ;;  %s1772_s1 = int_to_ptr.vmem [resolvable:$true] %s839_s1 }
  0xb3   : > { %1061 = vmatprep.mubr.msk.f32.mxu1 %vm1434_vm1, %v1433_v3  ;;  %1064 = vmatprep.subr.bf16.mxu1 %v1433_v3  ;;  %v795_v17 = vmul.f32 %v1023_v6, %v1732_v7  ;;  %s1343_s0 = scalar_lea.vmem %s1772_s1, 256  ;;  %p1869_p12 = scmp.ne.s32.totalorder %s1845_s9, 0 }
  0xb4   : > { %1049 = vmatpush3.bf16.msra.mxu0 %v1175_v13  ;;  %vm654_vm4 = vcmp.eq.s32.totalorder %v649_v22, 1  ;;  %vm655_vm6 = vcmp.eq.s32.totalorder %v653_v29, 1  ;;  %v796_v16 = vsel %vm427_vm0, %v794_v10, 0.0  ;;  %p1344_p5 = scmp.ne.s32.totalorder %s1772_s1, %s1343_s0  ;;  %s1436_s12 = smov [#allocation13]  }
  0xb5   : > { %1062 = vmatmul.mubr.msk.f32.vlgmr.msra.gmra.mxu1 %vm427_vm0, %v1015_v5  ;;  %1070 = vmatprep.subr.bf16.mxu0 %v1433_v3  ;;  %v1022_v5 = vld [vmem:[#allocation11 + $0x2] ss:$0 sm:$0xff]  ;;  %v799_v22 = vsel %vm427_vm0, %v795_v17, 0.0  ;;  %s1347_s18 = sshll.u32 %s1436_s12, 4  ;;  %s1348_s18 = int_to_ptr.vmem [resolvable:$false] %s1347_s18 }
  0xb6   : > { %482 = vadd.xlane.f32.xlu0 %v481_v11  ;;  %1066 = vmatprep.mubr.msk.bf16.mxu1 %vm1434_vm1, %v1433_v3  ;;  %p1345_p6 = pnand %p1344_p5, %p1869_p12  ;;  %s1349_s19 = scalar_lea.vmem %s1348_s18, 512 }
  0xb7   : > { %1051 = vmatmul.mubr.msk.bf16.vlgmr.msra.gmra.mxu0 %vm427_vm0, %v406_v4  ;;  %p1350_p0 = scmp.lt.s32.totalorder %s1772_s1, %s1348_s18  ;;  %p1351_p4 = scmp.lt.s32.totalorder %s1349_s19, %s1343_s0 }
  0xb8   : > { %1072 = vmatprep.mubr.msk.bf16.mxu0 %vm1434_vm1, %v1433_v3  ;;  %p1346_p2 = pneg %p1345_p6 }
  0xb9   : > { %p1352_p7 = por %p1351_p4, %p1350_p0 }
  0xbb   : > { %p1353_p3 = pnand %p1352_p7, %p1346_p2 }
 0x13b   : > { %v480_v21 = vpop.xlane.xlu0 %479 }
 0x13f   : > { %v483_v28 = vpop.xlane.xlu0 %482 }
 0x171   : > { %v560_v24 = vpop.f32.mrf.mxu1 }
 0x172   : > { %v637_v26 = vadd.f32 %v560_v24, %v480_v21 }
 0x173   : > { %v1058_v27 = vpop.f32.mrf.mxu1 }
 0x174   : > { %v640_v30 = vadd.f32 %v639_v25, %v637_v26  ;;  %v804_v26 = vstv %s1009_s15 }
 0x175   : > { %v633_v31 = vpop.f32.mrf.mxu1 }
 0x176   : > { %v638_v32 = vadd.f32 %v633_v31, %v483_v28  ;;  %v656_v33 = vsel %vm654_vm4, %v640_v30, -1e+09 }
 0x177   : > { %v1063_v34 = vpop.f32.mrf.mxu1  ;;  %v659_v35 = vsel %vm658_vm5, %v656_v33, -inf  ;;  %v465_v40 = vpop.f32.mrf.mxu0 }
 0x178   : > { %v641_v36 = vadd.f32 %v639_v25, %v638_v32  ;;  %660 = vmax.xlane.f32.xlu1 %v659_v35  ;;  %v466_v41 = vadd.f32 %v1010_v39, %v465_v40 }
 0x179   : > { %v1052_v42 = vpop.f32.mrf.mxu0 }
 0x17a   : > { %v657_v37 = vsel %vm655_vm6, %v641_v36, -1e+09  ;;  %v683_v43 = vpack.c.bf16 %v466_v41, %v466_v41 }
 0x17b   : > { %v662_v38 = vsel %vm658_vm5, %v657_v37, -inf  ;;  %v468_v55 = vpop.f32.mrf.mxu0 }
 0x17c   : > { %663 = vmax.xlane.f32.xlu1 %v662_v38  ;;  %v690_v44 = vsel %vm688_vm7, %v683_v43, 0  ;;  %v469_v56 = vadd.f32 %v1010_v39, %v468_v55 }
 0x17d   : > { %1065 = vmatpush3.bf16.msra.mxu1 %v690_v44  ;;  %v1053_v57 = vpop.f32.mrf.mxu0 }
 0x17e   : > { %v684_v58 = vpack.c.bf16 %v469_v56, %v469_v56 }
 0x180   : > { %v736_v59 = vsel %vm688_vm7, %v684_v58, 0 }
 0x181   : > { %1071 = vmatpush3.bf16.msra.mxu0 %v736_v59 }
 0x201   : > { %v661_v45 = vpop.xlane.xlu1 %660 }
 0x202   : > { %v665_v46 = vsub.f32 %v656_v33, %v661_v45 }
 0x204   : > { %v667_v47 = vmul.f32 1.442695, %v665_v46 }
 0x205   : > { %v664_v48 = vpop.xlane.xlu1 %663 }
 0x206   : > { %1176 = vpow2.f32 %v667_v47  ;;  %v666_v49 = vsub.f32 %v657_v37, %v664_v48 }
 0x208   : > { %v669_v50 = vmul.f32 1.442695, %v666_v49 }
 0x20a   : > { %1178 = vpow2.f32 %v669_v50 }
 0x213   : > { %v1177_v51 = vpop.eup %1176 }
 0x214   : > { %v671_v52 = vsel %vm658_vm5, %v1177_v51, 0.0 }
 0x215   : > { %672 = vadd.xlane.f32.xlu0 %v671_v52 }
 0x217   : > { %v1179_v53 = vpop.eup %1178 }
 0x218   : > { %v674_v54 = vsel %vm658_vm5, %v1179_v53, 0.0 }
 0x219   : > { %675 = vadd.xlane.f32.xlu1 %v674_v54 }
 0x29e   : > { %v673_v60 = vpop.xlane.xlu0 %672 }
 0x29f   : > { %1180 = vrcp.f32 %v673_v60 }
 0x2a2   : > { %v676_v61 = vpop.xlane.xlu1 %675 }
 0x2a3   : > { %1182 = vrcp.f32 %v676_v61 }
 0x2ac   : > { %v1181_v62 = vpop.eup %1180 }
 0x2ad   : > { %v679_v63 = vmul.f32 %v1181_v62, %v1177_v51 }
 0x2af   : > { %v681_v0 = vpack.c.bf16 %v679_v63, %v679_v63 }
 0x2b0   : > { %v1183_v1 = vpop.eup %1182 }
 0x2b1   : > { %1067 = vmatmul.mubr.msk.bf16.vlgmr.msra.gmra.mxu1 %vm658_vm5, %v681_v0  ;;  %v680_v3 = vmul.f32 %v1183_v1, %v1179_v53 }
 0x2b3   : > { %v682_v4 = vpack.c.bf16 %v680_v3, %v680_v3 }
 0x2b5   : > { %1073 = vmatmul.mubr.msk.bf16.vlgmr.msra.gmra.mxu0 %vm658_vm5, %v682_v4 }
 0x371   : > { %v726_v8 = vpop.f32.mrf.mxu1 }
 0x372   : > { %v782_v9 = vmul.f32 %v1022_v5, %v726_v8 }
 0x373   : > { %v1068_v11 = vpop.f32.mrf.mxu1 }
 0x374   : > { %v784_v12 = vsel %vm427_vm0, %v782_v9, 0.0 }
 0x375   : > { %v772_v13 = vpop.f32.mrf.mxu0  ;;  %785 = vadd.xlane.f32.xlu0 %v784_v12  ;;  %v729_v14 = vpop.f32.mrf.mxu1 }
 0x376   : > { %v783_v15 = vmul.f32 %v1022_v5, %v772_v13 }
 0x377   : > { %v1069_v18 = vpop.f32.mrf.mxu1  ;;  %v1074_v19 = vpop.f32.mrf.mxu0 }
 0x378   : > { %v787_v20 = vsel %vm427_vm0, %v783_v15, 0.0 }
 0x379   : > { %788 = vadd.xlane.f32.xlu1 %v787_v20  ;;  %v775_v21 = vpop.f32.mrf.mxu0  ;;  %797 = vadd.xlane.f32.xlu0 %v796_v16 }
 0x37b   : > { %v1075_v23 = vpop.f32.mrf.mxu0 }
 0x37d   : > { %800 = vadd.xlane.f32.xlu1 %v799_v22 }
 0x3fe   : > { %v786_v24 = vpop.xlane.xlu0 %785 }
 0x402   : > { %v789_v25 = vpop.xlane.xlu1 %788  ;;  %v798_v27 = vpop.xlane.xlu0 %797 }
 0x403   : > { %v802_v28 = vadd.f32 %v798_v27, %v786_v24 }
 0x405   : > { %v805_v29 = vadd.f32 %v804_v26, %v802_v28 }
 0x406   : > { %v801_v30 = vpop.xlane.xlu1 %800 }
 0x407   : > { %v1024_v31 = vmul.f32 -1.442695, %v805_v29  ;;  %v803_v32 = vadd.f32 %v801_v30, %v789_v25 }
 0x409   : > { %1184 = vpow2.f32 %v1024_v31  ;;  %v806_v33 = vadd.f32 %v804_v26, %v803_v32 }
 0x40b   : > { %v1025_v34 = vmul.f32 -1.442695, %v806_v33 }
 0x40d   : > { %1186 = vpow2.f32 %v1025_v34 }
 0x416   : > { %v1185_v35 = vpop.eup %1184 }
 0x417   : > { %v813_v36 = vadd.f32 1.0, %v1185_v35 }
 0x419   : > { %1188 = vrcp.f32 %v813_v36 }
 0x41a   : > { %v1187_v37 = vpop.eup %1186 }
 0x41b   : > { %v814_v38 = vadd.f32 1.0, %v1187_v37 }
 0x41d   : > { %1190 = vrcp.f32 %v814_v38 }
 0x426   : > { %v1189_v39 = vpop.eup %1188 }
 0x427   : > { %v819_v40 = vmul.f32 %v1189_v39, %v726_v8 }
 0x429   : > { %v821_v41 = vadd.f32 %v819_v40, %v1729_v2 }
 0x42a   : > { %v1191_v42 = vpop.eup %1190 }
 0x42b   : > { %v820_v43 = vmul.f32 %v1191_v42, %v772_v13  ;;  %823 = vst.msk [vmem:[%s387_s14] sm:$0xff] %vm427_vm0, %v821_v41 }
 0x42d   : > { %v822_v44 = vadd.f32 %v820_v43, %v1732_v7 }
 0x42f   : > { %824 = vst.msk [vmem:[%s387_s14 + $0x8] sm:$0xff] %vm427_vm0, %v822_v44 }
 0x430   : > { %1356 = shalt.err (!%p1353_p3)
}
 0x431   : > { %s1357_s30 = scalar_lea.hbm %s1770_s26, 256  ;;  %s1361_s7 = scalar_lea.hbm %s1823_s6, 512 }
 0x432   : > { %p1358_p11 = scmp.ne.s32.totalorder %s1770_s26, %s1357_s30  ;;  %p1362_p9 = scmp.lt.s32.totalorder %s1770_s26, %s1823_s6 }
 0x433   : > { %p1363_p10 = scmp.lt.s32.totalorder %s1361_s7, %s1357_s30 }
 0x434   : > { %p1359_p8 = pnand %p1358_p11, %p1869_p12 }
 0x435   : > { %p1364_p1 = por %p1363_p10, %p1362_p9 }
 0x436   : > { %p1360_p13 = pneg %p1359_p8 }
 0x438   : > { %p1365_p5 = pnand %p1364_p1, %p1360_p13 }
 0x43a   : > { %1368 = shalt.err (!%p1365_p5)
}
 0x43b   : > { %s1437_s8 = smov 128   ;;  %s1438_s15 = smov 8  }
 0x43c   : > { %1094 = dma.vmem_to_hbm [thread:$0]  (%p1869_p12), %s1772_s1, 256, %s1770_s26, %s826_s25, %s1437_s8, %s1437_s8, %s1438_s15  }
 0x43d PF: > { %s854_s23 = sand.u32 1, %s1407_s21   ;;  %p1870_p6 = scmp.ne.s32.totalorder %s1846_s10, 0 }
 0x43e   : > { %p1871_p2 = scmp.ge.s32.totalorder %s1419_s24, 2  ;;  %s855_s14 = scalar_lea.sflag [#allocation4], %s854_s23 }
 0x440   : > { %p1117_p0 = pnand %p1871_p2, %p1870_p6 }
 0x442   : > { %p1118_p4 = pneg %p1117_p0 }
 0x444   : > { %1402 = dma.done.wait (%p1118_p4), %s855_s14, 256  }
 0x445   : > { %1404 = vsyncadd (%p1118_p4), %s855_s14, 4294967040  ;;  %s1872_s17 = sld [smem:[#allocation19_spill]]  ;;  %p24_p7 = scmp.ge.s32.totalorder %s1499_s27, 4  }
 0x446   : > { %s1873_s23 = sld [smem:[#allocation20_spill]]  ;;  %s1874_s21 = smov %s1411_s22 }
 0x447   : > { %s1876_s24 = smov %s1499_s27  ;;  %26 = sbr.rel (!%p24_p7) target bundleno = 12 (0xc), region = 126 }
 0x44b   : > { %s1875_s22 = smov %s1872_s17 }
 0x44c   :  { %860 = vsyncpa [#allocation3], 1 }
 0x44d   :  { %862 = vsyncpa [#allocation3 + $0x1], 1 }
 0x44e   :  { %863 = vsyncpa [#allocation7], 1 }
 0x44f   :  { %865 = vsyncpa [#allocation7 + $0x1], 1 }
 0x450   :  { %866 = vsyncpa [#allocation10], 1 }
 0x451   :  { %867 = vsyncpa [#allocation4], 1 }
 0x452   :  { %869 = vsyncpa [#allocation4 + $0x1], 1 }
 0x453   :  { %870 = vsyncpa [#allocation5], 1 }
 0x454   :  { %872 = vsyncpa [#allocation5 + $0x1], 1 }

</bundles_post_ra>
